<compile_context>
chip_gen: v6e
topology: v6e:2x2x1
jax: 0.10.0
libtpu: 0.0.40
codegen_flags: <defaults>
</compile_context>

<pallas_src>
import math
from functools import partial

import jax
import jax.numpy as jnp
from jax.experimental import pallas as pl
from jax.experimental.pallas import tpu as pltpu

LN_EPS = 1e-5  # nn.LayerNorm default


def _layernorm(h, gamma, beta):
    mu = jnp.mean(h, axis=-1, keepdims=True)
    var = jnp.mean((h - mu) * (h - mu), axis=-1, keepdims=True)
    return (h - mu) * jax.lax.rsqrt(var + LN_EPS) * gamma + beta


def actor_kernel(x_ref,
                 w1_ref, b1_ref, g1_ref, be1_ref,
                 w2_ref, b2_ref, g2_ref, be2_ref,
                 w3_ref, b3_ref, g3_ref, be3_ref,
                 w4_ref, b4_ref,
                 o_ref):
    # MXU-input dtype (f32 or bf16); accumulation + LayerNorm stay f32.
    cdt = w1_ref.dtype

    # Block 1: Linear -> LayerNorm -> ReLU
    h = jnp.dot(x_ref[...], w1_ref[...],
                preferred_element_type=jnp.float32) + b1_ref[...]
    h = _layernorm(h, g1_ref[...], be1_ref[...])
    h = jnp.maximum(h, 0.0)

    # Block 2
    h = jnp.dot(h.astype(cdt), w2_ref[...],
                preferred_element_type=jnp.float32) + b2_ref[...]
    h = _layernorm(h, g2_ref[...], be2_ref[...])
    h = jnp.maximum(h, 0.0)

    # Block 3
    h = jnp.dot(h.astype(cdt), w3_ref[...],
                preferred_element_type=jnp.float32) + b3_ref[...]
    h = _layernorm(h, g3_ref[...], be3_ref[...])
    h = jnp.maximum(h, 0.0)

    # Output head (lane-padded to a multiple of 128 -> unmasked full-lane vst).
    out = jnp.dot(h.astype(cdt), w4_ref[...],
                  preferred_element_type=jnp.float32) + b4_ref[...]
    o_ref[...] = out.astype(o_ref.dtype)


def prepare_params(params, *, use_bf16=False):
    """One-time packing of parameters into kernel argument order.

    Pads the output head to a lane-dense width (multiple of 128) and casts the
    MXU weight matrices to the requested compute dtype. Returns (args, n_out).
    """
    cdt = jnp.bfloat16 if use_bf16 else jnp.float32
    n_out = params["w4"].shape[1]
    n_out_pad = max(128, pl.cdiv(n_out, 128) * 128)

    w4p = jnp.zeros((params["w4"].shape[0], n_out_pad), cdt)
    w4p = w4p.at[:, :n_out].set(params["w4"].astype(cdt))
    b4p = jnp.zeros((1, n_out_pad), jnp.float32)
    b4p = b4p.at[:, :n_out].set(params["b4"])

    args = (
        params["w1"].astype(cdt), params["b1"], params["g1"], params["be1"],
        params["w2"].astype(cdt), params["b2"], params["g2"], params["be2"],
        params["w3"].astype(cdt), params["b3"], params["g3"], params["be3"],
        w4p, b4p,
    )
    return args, n_out


def _pick_batch_tile(B):
    if B <= 128:
        return B
    tm = 128
    while B % tm:
        tm //= 2
    return tm


@partial(jax.jit, static_argnames=("use_bf16", "tm"))
def base_actor_forward(x, params, *, tm=None, use_bf16=False):
    """Run the Base_Actor MLP as a single fused Pallas kernel, tiled over batch."""
    B, d_in = x.shape
    weight_args, n_out = prepare_params(params, use_bf16=use_bf16)
    n_out_pad = weight_args[-1].shape[1]
    cdt = weight_args[0].dtype

    if tm is None:
        tm = _pick_batch_tile(B)
    assert B % tm == 0, "batch must be a multiple of the batch tile"

    def full_spec(a):
        # Whole array, constant block index -> stays resident in VMEM across
        # all grid steps (no per-step re-DMA of the constants).
        nd = a.ndim
        return pl.BlockSpec(a.shape, lambda i, _nd=nd: (0,) * _nd)

    in_specs = [pl.BlockSpec((tm, d_in), lambda i: (i, 0))]
    in_specs += [full_spec(a) for a in weight_args]
    out_spec = pl.BlockSpec((tm, n_out_pad), lambda i: (i, 0))

    out_padded = pl.pallas_call(
        actor_kernel,
        out_shape=jax.ShapeDtypeStruct((B, n_out_pad), jnp.float32),
        grid_spec=pltpu.PrefetchScalarGridSpec(
            num_scalar_prefetch=0,
            grid=(B // tm,),
            in_specs=in_specs,
            out_specs=out_spec,
        ),
        compiler_params=pltpu.CompilerParams(
            dimension_semantics=("parallel",)),
    )(x.astype(cdt), *weight_args)

    # Slice the lane padding back off.
    return out_padded[:, :n_out]


def make_params(key, mlp_input, num_action_logits):
    """Deterministic init mirroring layer_init (orthogonal, gain sqrt(2), bias 0)
    and nn.LayerNorm defaults (gamma=1, beta=0). Weights stored as (in, out)."""
    dims = [(mlp_input, 256), (256, 128), (128, 64), (64, num_action_logits)]
    orth = jax.nn.initializers.orthogonal(scale=math.sqrt(2))
    params = {}
    keys = jax.random.split(key, len(dims))
    for idx, ((din, dout), k) in enumerate(zip(dims, keys), start=1):
        params[f"w{idx}"] = orth(k, (din, dout), jnp.float32)
        params[f"b{idx}"] = jnp.zeros((1, dout), jnp.float32)
        if idx < 4:  # LayerNorm after first three linears
            params[f"g{idx}"] = jnp.ones((1, dout), jnp.float32)
            params[f"be{idx}"] = jnp.zeros((1, dout), jnp.float32)
    return params


def base_actor_reference(x, params):
    """Pure-JAX reference for correctness checking."""
    h = x.astype(jnp.float32)
    for idx in range(1, 4):
        h = h @ params[f"w{idx}"] + params[f"b{idx}"]
        h = _layernorm(h, params[f"g{idx}"], params[f"be{idx}"])
        h = jnp.maximum(h, 0.0)
    return h @ params["w4"] + params["b4"]


if __name__ == "__main__":
    B = 16
    MLP_INPUT = 32
    NUM_ACTION_LOGITS = 7

    key = jax.random.PRNGKey(0)
    kx, kp = jax.random.split(key)
    x = jax.random.normal(kx, (B, MLP_INPUT), jnp.float32)
    params = make_params(kp, MLP_INPUT, NUM_ACTION_LOGITS)

    ref = base_actor_reference(x, params)

    # f32 path: whole batch in one grid step, lane-padded output head.
    out = jax.block_until_ready(base_actor_forward(x, params))
    assert out.shape == (B, NUM_ACTION_LOGITS)
    assert jnp.allclose(out, ref, atol=1e-4, rtol=1e-4)

    # bf16 MXU-input path (v6e/v7x lever); f32 accumulation + f32 LayerNorm,
    # so only matmul-input rounding differs -> loose tolerance check.
    out_bf16 = jax.block_until_ready(base_actor_forward(x, params, use_bf16=True))
    assert out_bf16.shape == (B, NUM_ACTION_LOGITS)
    assert jnp.allclose(out_bf16, ref, atol=1e-1, rtol=5e-2)

    print("KERNEL_OK")
</pallas_src>

<mosaic_0001>
module attributes {stable_mosaic.version = 11 : i64} {
  func.func @actor_kernel(%arg0: i32, %arg1: memref<16x32xf32, #tpu.memory_space<vmem>>, %arg2: memref<32x256xf32, #tpu.memory_space<vmem>>, %arg3: memref<1x256xf32, #tpu.memory_space<vmem>>, %arg4: memref<1x256xf32, #tpu.memory_space<vmem>>, %arg5: memref<1x256xf32, #tpu.memory_space<vmem>>, %arg6: memref<256x128xf32, #tpu.memory_space<vmem>>, %arg7: memref<1x128xf32, #tpu.memory_space<vmem>>, %arg8: memref<1x128xf32, #tpu.memory_space<vmem>>, %arg9: memref<1x128xf32, #tpu.memory_space<vmem>>, %arg10: memref<128x64xf32, #tpu.memory_space<vmem>>, %arg11: memref<1x64xf32, #tpu.memory_space<vmem>>, %arg12: memref<1x64xf32, #tpu.memory_space<vmem>>, %arg13: memref<1x64xf32, #tpu.memory_space<vmem>>, %arg14: memref<64x128xf32, #tpu.memory_space<vmem>>, %arg15: memref<1x128xf32, #tpu.memory_space<vmem>>, %arg16: memref<16x128xf32, #tpu.memory_space<vmem>>) attributes {dimension_semantics = [#tpu.dimension_semantics<parallel>], iteration_bounds = array<i64: 1>, scalar_prefetch = 0 : i64, scratch_operands = 0 : i64, tpu.core_type = #tpu.core_type<tc>, window_params = [{transform_indices = @transform_0, window_bounds = array<i64: 16, 32>}, {pipeline_mode = #tpu.pipeline_mode<synchronous>, transform_indices = @transform_1, window_bounds = array<i64: 32, 256>}, {pipeline_mode = #tpu.pipeline_mode<synchronous>, transform_indices = @transform_2, window_bounds = array<i64: 1, 256>}, {pipeline_mode = #tpu.pipeline_mode<synchronous>, transform_indices = @transform_3, window_bounds = array<i64: 1, 256>}, {pipeline_mode = #tpu.pipeline_mode<synchronous>, transform_indices = @transform_4, window_bounds = array<i64: 1, 256>}, {pipeline_mode = #tpu.pipeline_mode<synchronous>, transform_indices = @transform_5, window_bounds = array<i64: 256, 128>}, {pipeline_mode = #tpu.pipeline_mode<synchronous>, transform_indices = @transform_6, window_bounds = array<i64: 1, 128>}, {pipeline_mode = #tpu.pipeline_mode<synchronous>, transform_indices = @transform_7, window_bounds = array<i64: 1, 128>}, {pipeline_mode = #tpu.pipeline_mode<synchronous>, transform_indices = @transform_8, window_bounds = array<i64: 1, 128>}, {pipeline_mode = #tpu.pipeline_mode<synchronous>, transform_indices = @transform_9, window_bounds = array<i64: 128, 64>}, {pipeline_mode = #tpu.pipeline_mode<synchronous>, transform_indices = @transform_10, window_bounds = array<i64: 1, 64>}, {pipeline_mode = #tpu.pipeline_mode<synchronous>, transform_indices = @transform_11, window_bounds = array<i64: 1, 64>}, {pipeline_mode = #tpu.pipeline_mode<synchronous>, transform_indices = @transform_12, window_bounds = array<i64: 1, 64>}, {pipeline_mode = #tpu.pipeline_mode<synchronous>, transform_indices = @transform_13, window_bounds = array<i64: 64, 128>}, {pipeline_mode = #tpu.pipeline_mode<synchronous>, transform_indices = @transform_14, window_bounds = array<i64: 1, 128>}, {transform_indices = @transform_15, window_bounds = array<i64: 16, 128>}]} {
    %c0 = arith.constant 0 : index
    %c0_0 = arith.constant 0 : index
    %0 = vector.load %arg1[%c0, %c0_0] : memref<16x32xf32, #tpu.memory_space<vmem>>, vector<16x32xf32>
    %c0_1 = arith.constant 0 : index
    %c0_2 = arith.constant 0 : index
    %1 = vector.load %arg2[%c0_1, %c0_2] : memref<32x256xf32, #tpu.memory_space<vmem>>, vector<32x256xf32>
    %cst = arith.constant dense<0.000000e+00> : vector<16x256xf32>
    %2 = tpu.matmul %0, %1, %cst {dimension_numbers = #tpu.dot_dimension_numbers<[1], [0], [0], [1], [0, 0, 1, 1], [], []>} : vector<16x32xf32>, vector<32x256xf32>, vector<16x256xf32> -> vector<16x256xf32>
    %c0_3 = arith.constant 0 : index
    %c0_4 = arith.constant 0 : index
    %3 = vector.load %arg3[%c0_3, %c0_4] : memref<1x256xf32, #tpu.memory_space<vmem>>, vector<1x256xf32>
    %4 = vector.broadcast %3 : vector<1x256xf32> to vector<16x256xf32>
    %5 = arith.addf %2, %4 : vector<16x256xf32>
    %c0_5 = arith.constant 0 : index
    %c0_6 = arith.constant 0 : index
    %6 = vector.load %arg4[%c0_5, %c0_6] : memref<1x256xf32, #tpu.memory_space<vmem>>, vector<1x256xf32>
    %c0_7 = arith.constant 0 : index
    %c0_8 = arith.constant 0 : index
    %7 = vector.load %arg5[%c0_7, %c0_8] : memref<1x256xf32, #tpu.memory_space<vmem>>, vector<1x256xf32>
    %cst_9 = arith.constant dense<0.000000e+00> : vector<16xf32>
    %8 = vector.multi_reduction <add>, %5, %cst_9 [1] : vector<16x256xf32> to vector<16xf32>
    %9 = vector.shape_cast %8 : vector<16xf32> to vector<16x1xf32>
    %cst_10 = arith.constant 2.560000e+02 : f32
    %10 = vector.broadcast %cst_10 : f32 to vector<16x1xf32>
    %11 = arith.divf %9, %10 : vector<16x1xf32>
    %12 = vector.broadcast %11 : vector<16x1xf32> to vector<16x256xf32>
    %13 = arith.subf %5, %12 : vector<16x256xf32>
    %14 = vector.broadcast %11 : vector<16x1xf32> to vector<16x256xf32>
    %15 = arith.subf %5, %14 : vector<16x256xf32>
    %16 = arith.mulf %13, %15 : vector<16x256xf32>
    %cst_11 = arith.constant dense<0.000000e+00> : vector<16xf32>
    %17 = vector.multi_reduction <add>, %16, %cst_11 [1] : vector<16x256xf32> to vector<16xf32>
    %18 = vector.shape_cast %17 : vector<16xf32> to vector<16x1xf32>
    %cst_12 = arith.constant 2.560000e+02 : f32
    %19 = vector.broadcast %cst_12 : f32 to vector<16x1xf32>
    %20 = arith.divf %18, %19 : vector<16x1xf32>
    %21 = vector.broadcast %11 : vector<16x1xf32> to vector<16x256xf32>
    %22 = arith.subf %5, %21 : vector<16x256xf32>
    %cst_13 = arith.constant 9.99999974E-6 : f32
    %23 = vector.broadcast %cst_13 : f32 to vector<16x1xf32>
    %24 = arith.addf %20, %23 : vector<16x1xf32>
    %25 = math.rsqrt %24 : vector<16x1xf32>
    %26 = vector.broadcast %25 : vector<16x1xf32> to vector<16x256xf32>
    %27 = arith.mulf %22, %26 : vector<16x256xf32>
    %28 = vector.broadcast %6 : vector<1x256xf32> to vector<16x256xf32>
    %29 = arith.mulf %27, %28 : vector<16x256xf32>
    %30 = vector.broadcast %7 : vector<1x256xf32> to vector<16x256xf32>
    %31 = arith.addf %29, %30 : vector<16x256xf32>
    %cst_14 = arith.constant 0.000000e+00 : f32
    %32 = vector.broadcast %cst_14 : f32 to vector<16x256xf32>
    %33 = arith.maximumf %31, %32 : vector<16x256xf32>
    %c0_15 = arith.constant 0 : index
    %c0_16 = arith.constant 0 : index
    %34 = vector.load %arg6[%c0_15, %c0_16] : memref<256x128xf32, #tpu.memory_space<vmem>>, vector<256x128xf32>
    %cst_17 = arith.constant dense<0.000000e+00> : vector<16x128xf32>
    %35 = tpu.matmul %33, %34, %cst_17 {dimension_numbers = #tpu.dot_dimension_numbers<[1], [0], [0], [1], [0, 0, 1, 1], [], []>} : vector<16x256xf32>, vector<256x128xf32>, vector<16x128xf32> -> vector<16x128xf32>
    %c0_18 = arith.constant 0 : index
    %c0_19 = arith.constant 0 : index
    %36 = vector.load %arg7[%c0_18, %c0_19] : memref<1x128xf32, #tpu.memory_space<vmem>>, vector<1x128xf32>
    %37 = vector.broadcast %36 : vector<1x128xf32> to vector<16x128xf32>
    %38 = arith.addf %35, %37 : vector<16x128xf32>
    %c0_20 = arith.constant 0 : index
    %c0_21 = arith.constant 0 : index
    %39 = vector.load %arg8[%c0_20, %c0_21] : memref<1x128xf32, #tpu.memory_space<vmem>>, vector<1x128xf32>
    %c0_22 = arith.constant 0 : index
    %c0_23 = arith.constant 0 : index
    %40 = vector.load %arg9[%c0_22, %c0_23] : memref<1x128xf32, #tpu.memory_space<vmem>>, vector<1x128xf32>
    %cst_24 = arith.constant dense<0.000000e+00> : vector<16xf32>
    %41 = vector.multi_reduction <add>, %38, %cst_24 [1] : vector<16x128xf32> to vector<16xf32>
    %42 = vector.shape_cast %41 : vector<16xf32> to vector<16x1xf32>
    %cst_25 = arith.constant 1.280000e+02 : f32
    %43 = vector.broadcast %cst_25 : f32 to vector<16x1xf32>
    %44 = arith.divf %42, %43 : vector<16x1xf32>
    %45 = vector.broadcast %44 : vector<16x1xf32> to vector<16x128xf32>
    %46 = arith.subf %38, %45 : vector<16x128xf32>
    %47 = vector.broadcast %44 : vector<16x1xf32> to vector<16x128xf32>
    %48 = arith.subf %38, %47 : vector<16x128xf32>
    %49 = arith.mulf %46, %48 : vector<16x128xf32>
    %cst_26 = arith.constant dense<0.000000e+00> : vector<16xf32>
    %50 = vector.multi_reduction <add>, %49, %cst_26 [1] : vector<16x128xf32> to vector<16xf32>
    %51 = vector.shape_cast %50 : vector<16xf32> to vector<16x1xf32>
    %cst_27 = arith.constant 1.280000e+02 : f32
    %52 = vector.broadcast %cst_27 : f32 to vector<16x1xf32>
    %53 = arith.divf %51, %52 : vector<16x1xf32>
    %54 = vector.broadcast %44 : vector<16x1xf32> to vector<16x128xf32>
    %55 = arith.subf %38, %54 : vector<16x128xf32>
    %cst_28 = arith.constant 9.99999974E-6 : f32
    %56 = vector.broadcast %cst_28 : f32 to vector<16x1xf32>
    %57 = arith.addf %53, %56 : vector<16x1xf32>
    %58 = math.rsqrt %57 : vector<16x1xf32>
    %59 = vector.broadcast %58 : vector<16x1xf32> to vector<16x128xf32>
    %60 = arith.mulf %55, %59 : vector<16x128xf32>
    %61 = vector.broadcast %39 : vector<1x128xf32> to vector<16x128xf32>
    %62 = arith.mulf %60, %61 : vector<16x128xf32>
    %63 = vector.broadcast %40 : vector<1x128xf32> to vector<16x128xf32>
    %64 = arith.addf %62, %63 : vector<16x128xf32>
    %cst_29 = arith.constant 0.000000e+00 : f32
    %65 = vector.broadcast %cst_29 : f32 to vector<16x128xf32>
    %66 = arith.maximumf %64, %65 : vector<16x128xf32>
    %c0_30 = arith.constant 0 : index
    %c0_31 = arith.constant 0 : index
    %67 = vector.load %arg10[%c0_30, %c0_31] : memref<128x64xf32, #tpu.memory_space<vmem>>, vector<128x64xf32>
    %cst_32 = arith.constant dense<0.000000e+00> : vector<16x64xf32>
    %68 = tpu.matmul %66, %67, %cst_32 {dimension_numbers = #tpu.dot_dimension_numbers<[1], [0], [0], [1], [0, 0, 1, 1], [], []>} : vector<16x128xf32>, vector<128x64xf32>, vector<16x64xf32> -> vector<16x64xf32>
    %c0_33 = arith.constant 0 : index
    %c0_34 = arith.constant 0 : index
    %69 = vector.load %arg11[%c0_33, %c0_34] : memref<1x64xf32, #tpu.memory_space<vmem>>, vector<1x64xf32>
    %70 = vector.broadcast %69 : vector<1x64xf32> to vector<16x64xf32>
    %71 = arith.addf %68, %70 : vector<16x64xf32>
    %c0_35 = arith.constant 0 : index
    %c0_36 = arith.constant 0 : index
    %72 = vector.load %arg12[%c0_35, %c0_36] : memref<1x64xf32, #tpu.memory_space<vmem>>, vector<1x64xf32>
    %c0_37 = arith.constant 0 : index
    %c0_38 = arith.constant 0 : index
    %73 = vector.load %arg13[%c0_37, %c0_38] : memref<1x64xf32, #tpu.memory_space<vmem>>, vector<1x64xf32>
    %cst_39 = arith.constant dense<0.000000e+00> : vector<16xf32>
    %74 = vector.multi_reduction <add>, %71, %cst_39 [1] : vector<16x64xf32> to vector<16xf32>
    %75 = vector.shape_cast %74 : vector<16xf32> to vector<16x1xf32>
    %cst_40 = arith.constant 6.400000e+01 : f32
    %76 = vector.broadcast %cst_40 : f32 to vector<16x1xf32>
    %77 = arith.divf %75, %76 : vector<16x1xf32>
    %78 = vector.broadcast %77 : vector<16x1xf32> to vector<16x64xf32>
    %79 = arith.subf %71, %78 : vector<16x64xf32>
    %80 = vector.broadcast %77 : vector<16x1xf32> to vector<16x64xf32>
    %81 = arith.subf %71, %80 : vector<16x64xf32>
    %82 = arith.mulf %79, %81 : vector<16x64xf32>
    %cst_41 = arith.constant dense<0.000000e+00> : vector<16xf32>
    %83 = vector.multi_reduction <add>, %82, %cst_41 [1] : vector<16x64xf32> to vector<16xf32>
    %84 = vector.shape_cast %83 : vector<16xf32> to vector<16x1xf32>
    %cst_42 = arith.constant 6.400000e+01 : f32
    %85 = vector.broadcast %cst_42 : f32 to vector<16x1xf32>
    %86 = arith.divf %84, %85 : vector<16x1xf32>
    %87 = vector.broadcast %77 : vector<16x1xf32> to vector<16x64xf32>
    %88 = arith.subf %71, %87 : vector<16x64xf32>
    %cst_43 = arith.constant 9.99999974E-6 : f32
    %89 = vector.broadcast %cst_43 : f32 to vector<16x1xf32>
    %90 = arith.addf %86, %89 : vector<16x1xf32>
    %91 = math.rsqrt %90 : vector<16x1xf32>
    %92 = vector.broadcast %91 : vector<16x1xf32> to vector<16x64xf32>
    %93 = arith.mulf %88, %92 : vector<16x64xf32>
    %94 = vector.broadcast %72 : vector<1x64xf32> to vector<16x64xf32>
    %95 = arith.mulf %93, %94 : vector<16x64xf32>
    %96 = vector.broadcast %73 : vector<1x64xf32> to vector<16x64xf32>
    %97 = arith.addf %95, %96 : vector<16x64xf32>
    %cst_44 = arith.constant 0.000000e+00 : f32
    %98 = vector.broadcast %cst_44 : f32 to vector<16x64xf32>
    %99 = arith.maximumf %97, %98 : vector<16x64xf32>
    %c0_45 = arith.constant 0 : index
    %c0_46 = arith.constant 0 : index
    %100 = vector.load %arg14[%c0_45, %c0_46] : memref<64x128xf32, #tpu.memory_space<vmem>>, vector<64x128xf32>
    %cst_47 = arith.constant dense<0.000000e+00> : vector<16x128xf32>
    %101 = tpu.matmul %99, %100, %cst_47 {dimension_numbers = #tpu.dot_dimension_numbers<[1], [0], [0], [1], [0, 0, 1, 1], [], []>} : vector<16x64xf32>, vector<64x128xf32>, vector<16x128xf32> -> vector<16x128xf32>
    %c0_48 = arith.constant 0 : index
    %c0_49 = arith.constant 0 : index
    %102 = vector.load %arg15[%c0_48, %c0_49] : memref<1x128xf32, #tpu.memory_space<vmem>>, vector<1x128xf32>
    %103 = vector.broadcast %102 : vector<1x128xf32> to vector<16x128xf32>
    %104 = arith.addf %101, %103 : vector<16x128xf32>
    %c0_50 = arith.constant 0 : index
    %c0_51 = arith.constant 0 : index
    %105 = vector.load %arg16[%c0_50, %c0_51] : memref<16x128xf32, #tpu.memory_space<vmem>>, vector<16x128xf32>
    tpu.vector_store %arg16[%c0_50, %c0_51], %104 {strides = array<i32>} : memref<16x128xf32, #tpu.memory_space<vmem>>, vector<16x128xf32>,
    return
  }
  func.func @transform_0(%arg0: i32) -> (i32, i32) {
    %c0_i32 = arith.constant 0 : i32
    %c0_i32_0 = arith.constant 0 : i32
    return %arg0, %c0_i32 : i32, i32
  }
  func.func @transform_1(%arg0: i32) -> (i32, i32) {
    %c0_i32 = arith.constant 0 : i32
    %c0_i32_0 = arith.constant 0 : i32
    %c0_i32_1 = arith.constant 0 : i32
    return %c0_i32, %c0_i32_0 : i32, i32
  }
  func.func @transform_2(%arg0: i32) -> (i32, i32) {
    %c0_i32 = arith.constant 0 : i32
    %c0_i32_0 = arith.constant 0 : i32
    %c0_i32_1 = arith.constant 0 : i32
    return %c0_i32, %c0_i32_0 : i32, i32
  }
  func.func @transform_3(%arg0: i32) -> (i32, i32) {
    %c0_i32 = arith.constant 0 : i32
    %c0_i32_0 = arith.constant 0 : i32
    %c0_i32_1 = arith.constant 0 : i32
    return %c0_i32, %c0_i32_0 : i32, i32
  }
  func.func @transform_4(%arg0: i32) -> (i32, i32) {
    %c0_i32 = arith.constant 0 : i32
    %c0_i32_0 = arith.constant 0 : i32
    %c0_i32_1 = arith.constant 0 : i32
    return %c0_i32, %c0_i32_0 : i32, i32
  }
  func.func @transform_5(%arg0: i32) -> (i32, i32) {
    %c0_i32 = arith.constant 0 : i32
    %c0_i32_0 = arith.constant 0 : i32
    %c0_i32_1 = arith.constant 0 : i32
    return %c0_i32, %c0_i32_0 : i32, i32
  }
  func.func @transform_6(%arg0: i32) -> (i32, i32) {
    %c0_i32 = arith.constant 0 : i32
    %c0_i32_0 = arith.constant 0 : i32
    %c0_i32_1 = arith.constant 0 : i32
    return %c0_i32, %c0_i32_0 : i32, i32
  }
  func.func @transform_7(%arg0: i32) -> (i32, i32) {
    %c0_i32 = arith.constant 0 : i32
    %c0_i32_0 = arith.constant 0 : i32
    %c0_i32_1 = arith.constant 0 : i32
    return %c0_i32, %c0_i32_0 : i32, i32
  }
  func.func @transform_8(%arg0: i32) -> (i32, i32) {
    %c0_i32 = arith.constant 0 : i32
    %c0_i32_0 = arith.constant 0 : i32
    %c0_i32_1 = arith.constant 0 : i32
    return %c0_i32, %c0_i32_0 : i32, i32
  }
  func.func @transform_9(%arg0: i32) -> (i32, i32) {
    %c0_i32 = arith.constant 0 : i32
    %c0_i32_0 = arith.constant 0 : i32
    %c0_i32_1 = arith.constant 0 : i32
    return %c0_i32, %c0_i32_0 : i32, i32
  }
  func.func @transform_10(%arg0: i32) -> (i32, i32) {
    %c0_i32 = arith.constant 0 : i32
    %c0_i32_0 = arith.constant 0 : i32
    %c0_i32_1 = arith.constant 0 : i32
    return %c0_i32, %c0_i32_0 : i32, i32
  }
  func.func @transform_11(%arg0: i32) -> (i32, i32) {
    %c0_i32 = arith.constant 0 : i32
    %c0_i32_0 = arith.constant 0 : i32
    %c0_i32_1 = arith.constant 0 : i32
    return %c0_i32, %c0_i32_0 : i32, i32
  }
  func.func @transform_12(%arg0: i32) -> (i32, i32) {
    %c0_i32 = arith.constant 0 : i32
    %c0_i32_0 = arith.constant 0 : i32
    %c0_i32_1 = arith.constant 0 : i32
    return %c0_i32, %c0_i32_0 : i32, i32
  }
  func.func @transform_13(%arg0: i32) -> (i32, i32) {
    %c0_i32 = arith.constant 0 : i32
    %c0_i32_0 = arith.constant 0 : i32
    %c0_i32_1 = arith.constant 0 : i32
    return %c0_i32, %c0_i32_0 : i32, i32
  }
  func.func @transform_14(%arg0: i32) -> (i32, i32) {
    %c0_i32 = arith.constant 0 : i32
    %c0_i32_0 = arith.constant 0 : i32
    %c0_i32_1 = arith.constant 0 : i32
    return %c0_i32, %c0_i32_0 : i32, i32
  }
  func.func @transform_15(%arg0: i32) -> (i32, i32) {
    %c0_i32 = arith.constant 0 : i32
    %c0_i32_0 = arith.constant 0 : i32
    return %arg0, %c0_i32 : i32, i32
  }
}

</mosaic_0001>

<bundles_post_ra>
// kernel: base_actor_forward.1
= control target key start
LH: loop header
LB: loop body
LE: loop exit
PB: predicated region body
PF: predicated region fallthrough
CT: control target
= control target key end

     0   :  { %v774_v3 = vmov 0.0   ;;  %vm72_vm0 = vcmask 261120   ;;  %v62_v11 = vlaneseq  ;;  %vm482_vm1 = vcmask 523264   ;;  %s1135_s1 = inlined_call_operand.vmem [shape: f32[32,256], index: 1, kind: input, shape index: {}]   ;;  %s1136_s0 = inlined_call_operand.vmem [shape: f32[16,32], index: 0, kind: input, shape index: {}]   ;;  %s1137_s2 = inlined_call_operand.vmem [shape: f32[1,256], index: 2, kind: input, shape index: {}]   ;;  %s1138_s5 = inlined_call_operand.vmem [shape: f32[256,128], index: 5, kind: input, shape index: {}]   ;;  %s1139_s3 = inlined_call_operand.vmem [shape: f32[1,256], index: 3, kind: input, shape index: {}]   ;;  %s1140_s4 = inlined_call_operand.vmem [shape: f32[1,256], index: 4, kind: input, shape index: {}]   ;;  %s1141_s6 = inlined_call_operand.vmem [shape: f32[1,128], index: 6, kind: input, shape index: {}]   ;;  %s1142_s9 = inlined_call_operand.vmem [shape: f32[128,64], index: 9, kind: input, shape index: {}]   ;;  %s1143_s7 = inlined_call_operand.vmem [shape: f32[1,128], index: 7, kind: input, shape index: {}]   ;;  %s1144_s8 = inlined_call_operand.vmem [shape: f32[1,128], index: 8, kind: input, shape index: {}]   ;;  %s1145_s10 = inlined_call_operand.vmem [shape: f32[1,64], index: 10, kind: input, shape index: {}]   ;;  %s1146_s13 = inlined_call_operand.vmem [shape: f32[64,128], index: 13, kind: input, shape index: {}]   ;;  %s1147_s11 = inlined_call_operand.vmem [shape: f32[1,64], index: 11, kind: input, shape index: {}]   ;;  %s1148_s12 = inlined_call_operand.vmem [shape: f32[1,64], index: 12, kind: input, shape index: {}]   ;;  %s1149_s14 = inlined_call_operand.vmem [shape: f32[1,128], index: 14, kind: input, shape index: {}]   ;;  %s1150_s15 = inlined_call_operand.vmem [shape: f32[16,128], index: 15, kind: output, shape index: {}]  }
   0x1   :  { %v59_v0 = vld [vmem:[%s1135_s1 + $0x38] sm:$0xff]  ;;  %v58_v1 = vld [vmem:[%s1135_s1 + $0x30] sm:$0xff]  ;;  %v57_v2 = vld [vmem:[%s1135_s1 + $0x28] sm:$0xff]  ;;  %143 = vmatprep.mubr.f32.mxu0 %v774_v3 }
   0x2   :  { %103 = vmatprep.subr.mxu0 %v59_v0  ;;  %v56_v4 = vld [vmem:[%s1135_s1 + $0x20] sm:$0xff]  ;;  %v55_v5 = vld [vmem:[%s1135_s1 + $0x18] sm:$0xff]  ;;  %v54_v6 = vld [vmem:[%s1135_s1 + $0x10] sm:$0xff]  ;;  %v63_v12 = vshrl.u32 %v62_v11, 7 }
   0x3   :  { %104 = vmatpush1.msra.mxu0 %v58_v1  ;;  %v53_v7 = vld [vmem:[%s1135_s1 + $0x8] sm:$0xff]  ;;  %v52_v8 = vld [vmem:[%s1135_s1] sm:$0xff]  ;;  %v256_v28 = vld [vmem:[%s1138_s5 + $0xf8] sm:$0xff] }
   0x4   :  { %105 = vmatprep.subr.mxu0 %v57_v2  ;;  %v50_v9 = vld [vmem:[%s1136_s0] sm:$0xff]  ;;  %v51_v10 = vld [vmem:[%s1136_s0 + $0x8] sm:$0xff]  ;;  %v885_v13 = vsub.s32 0, %v63_v12  ;;  %v887_v14 = vsub.s32 1, %v63_v12  ;;  %v240_v29 = vld [vmem:[%s1138_s5 + $0x78] sm:$0xff]  ;;  %641 = vmatprep.subr.mxu1 %v256_v28 }
   0x5   :  { %106 = vmatpush1.msra.mxu0 %v56_v4  ;;  %v60_v15 = vld [vmem:[%s1137_s2] sm:$0x3]  ;;  %v255_v30 = vld [vmem:[%s1138_s5 + $0xf0] sm:$0xff]  ;;  %642 = vmatpush3.msra.mxu1 %v240_v29  ;;  %v254_v32 = vld [vmem:[%s1138_s5 + $0xe8] sm:$0xff] }
   0x6   :  { %107 = vmatprep.subr.mxu0 %v55_v5  ;;  %v65_v16 = vrot.slane %v60_v15, %v885_v13  ;;  %v69_v17 = vrot.slane %v60_v15, %v887_v14  ;;  %v239_v31 = vld [vmem:[%s1138_s5 + $0x70] sm:$0xff]  ;;  %643 = vmatprep.subr.mxu1 %v255_v30  ;;  %v238_v47 = vld [vmem:[%s1138_s5 + $0x68] sm:$0xff]  ;;  %v253_v48 = vld [vmem:[%s1138_s5 + $0xe0] sm:$0xff] }
   0x7   :  { %108 = vmatpush1.msra.mxu0 %v54_v6  ;;  %644 = vmatpush3.msra.mxu1 %v239_v31  ;;  %v237_v49 = vld [vmem:[%s1138_s5 + $0x60] sm:$0xff]  ;;  %v252_v50 = vld [vmem:[%s1138_s5 + $0xd8] sm:$0xff]  ;;  %v251_v52 = vld [vmem:[%s1138_s5 + $0xd0] sm:$0xff] }
   0x8   :  { %109 = vmatprep.subr.mxu0 %v53_v7  ;;  %645 = vmatprep.subr.mxu1 %v254_v32  ;;  %v236_v51 = vld [vmem:[%s1138_s5 + $0x58] sm:$0xff]  ;;  %v235_v53 = vld [vmem:[%s1138_s5 + $0x50] sm:$0xff]  ;;  %v250_v54 = vld [vmem:[%s1138_s5 + $0xc8] sm:$0xff] }
   0x9   :  { %110 = vmatpush1.msra.mxu0 %v52_v8  ;;  %646 = vmatpush3.msra.mxu1 %v238_v47  ;;  %v234_v55 = vld [vmem:[%s1138_s5 + $0x48] sm:$0xff]  ;;  %v249_v56 = vld [vmem:[%s1138_s5 + $0xc0] sm:$0xff]  ;;  %v248_v58 = vld [vmem:[%s1138_s5 + $0xb8] sm:$0xff] }
   0xa   :  { %630 = vmatmul.mubr.msk.f32.vlgmr.msra.gmra.mxu0 %vm72_vm0, %v50_v9  ;;  %647 = vmatprep.subr.mxu1 %v253_v48  ;;  %v233_v57 = vld [vmem:[%s1138_s5 + $0x40] sm:$0xff]  ;;  %v232_v59 = vld [vmem:[%s1138_s5 + $0x38] sm:$0xff]  ;;  %v247_v60 = vld [vmem:[%s1138_s5 + $0xb0] sm:$0xff] }
   0xb   :  { %149 = vmatprep.mubr.f32.mxu0 %v774_v3  ;;  %648 = vmatpush3.msra.mxu1 %v237_v49  ;;  %v231_v61 = vld [vmem:[%s1138_s5 + $0x30] sm:$0xff]  ;;  %v246_v62 = vld [vmem:[%s1138_s5 + $0xa8] sm:$0xff]  ;;  %v245_v0 = vld [vmem:[%s1138_s5 + $0xa0] sm:$0xff] }
   0xc   :  { %649 = vmatprep.subr.mxu1 %v252_v50  ;;  %v230_v63 = vld [vmem:[%s1138_s5 + $0x28] sm:$0xff]  ;;  %v229_v1 = vld [vmem:[%s1138_s5 + $0x20] sm:$0xff]  ;;  %v244_v2 = vld [vmem:[%s1138_s5 + $0x98] sm:$0xff] }
   0xd   :  { %650 = vmatpush3.msra.mxu1 %v236_v51  ;;  %v228_v3 = vld [vmem:[%s1138_s5 + $0x18] sm:$0xff]  ;;  %v243_v4 = vld [vmem:[%s1138_s5 + $0x90] sm:$0xff]  ;;  %v242_v6 = vld [vmem:[%s1138_s5 + $0x88] sm:$0xff] }
   0xe   :  { %631 = vmatmul.mubr.msk.f32.gmra.mxu0 %vm72_vm0, %v51_v10  ;;  %651 = vmatprep.subr.mxu1 %v251_v52  ;;  %v227_v5 = vld [vmem:[%s1138_s5 + $0x10] sm:$0xff]  ;;  %v226_v7 = vld [vmem:[%s1138_s5 + $0x8] sm:$0xff]  ;;  %v241_v8 = vld [vmem:[%s1138_s5 + $0x80] sm:$0xff] }
   0xf   :  { %652 = vmatpush3.msra.mxu1 %v235_v53  ;;  %v225_v9 = vld [vmem:[%s1138_s5] sm:$0xff]  ;;  %v397_v49 = vld [vmem:[%s1142_s9 + $0x78] sm:$0xff] }
  0x10   :  { %653 = vmatprep.subr.mxu1 %v250_v54  ;;  %707 = vmatprep.subr.mxu0 %v397_v49 }
  0x11   :  { %654 = vmatpush3.msra.mxu1 %v234_v55  ;;  %708 = vmatpush3.msra.mxu0 %v397_v49  ;;  %v530_v49 = vld [vmem:[%s1146_s13 + $0x10] sm:$0xff] }
  0x12   :  { %655 = vmatprep.subr.mxu1 %v249_v56 }
  0x13   :  { %656 = vmatpush3.msra.mxu1 %v233_v57 }
  0x14   :  { %657 = vmatprep.subr.mxu1 %v248_v58  ;;  %v396_v58 = vld [vmem:[%s1142_s9 + $0x70] sm:$0xff] }
  0x15   :  { %658 = vmatpush3.msra.mxu1 %v232_v59  ;;  %709 = vmatprep.subr.mxu0 %v396_v58  ;;  %v395_v59 = vld [vmem:[%s1142_s9 + $0x68] sm:$0xff] }
  0x16   :  { %659 = vmatprep.subr.mxu1 %v247_v60  ;;  %710 = vmatpush3.msra.mxu0 %v396_v58  ;;  %v394_v60 = vld [vmem:[%s1142_s9 + $0x60] sm:$0xff] }
  0x17   :  { %660 = vmatpush3.msra.mxu1 %v231_v61  ;;  %711 = vmatprep.subr.mxu0 %v395_v59  ;;  %v393_v61 = vld [vmem:[%s1142_s9 + $0x58] sm:$0xff] }
  0x18   :  { %661 = vmatprep.subr.mxu1 %v246_v62  ;;  %712 = vmatpush3.msra.mxu0 %v395_v59  ;;  %v392_v62 = vld [vmem:[%s1142_s9 + $0x50] sm:$0xff]  ;;  %v636_v59 = vld [vmem:[%s1147_s11] ss:$0 sm:$0xff] }
  0x19   :  { %662 = vmatpush3.msra.mxu1 %v230_v63  ;;  %713 = vmatprep.subr.mxu0 %v394_v60  ;;  %v391_v63 = vld [vmem:[%s1142_s9 + $0x48] sm:$0xff] }
  0x1a   :  { %663 = vmatprep.subr.mxu1 %v245_v0  ;;  %714 = vmatpush3.msra.mxu0 %v394_v60  ;;  %v390_v0 = vld [vmem:[%s1142_s9 + $0x40] sm:$0xff] }
  0x1b   :  { %664 = vmatpush3.msra.mxu1 %v229_v1  ;;  %715 = vmatprep.subr.mxu0 %v393_v61  ;;  %v389_v1 = vld [vmem:[%s1142_s9 + $0x38] sm:$0xff] }
  0x1c   :  { %665 = vmatprep.subr.mxu1 %v244_v2  ;;  %716 = vmatpush3.msra.mxu0 %v393_v61  ;;  %v388_v2 = vld [vmem:[%s1142_s9 + $0x30] sm:$0xff] }
  0x1d   :  { %666 = vmatpush3.msra.mxu1 %v228_v3  ;;  %717 = vmatprep.subr.mxu0 %v392_v62  ;;  %v387_v3 = vld [vmem:[%s1142_s9 + $0x28] sm:$0xff] }
  0x1e   :  { %667 = vmatprep.subr.mxu1 %v243_v4  ;;  %718 = vmatpush3.msra.mxu0 %v392_v62  ;;  %v386_v4 = vld [vmem:[%s1142_s9 + $0x20] sm:$0xff] }
  0x1f   :  { %668 = vmatpush3.msra.mxu1 %v227_v5  ;;  %719 = vmatprep.subr.mxu0 %v391_v63  ;;  %v385_v5 = vld [vmem:[%s1142_s9 + $0x18] sm:$0xff]  ;;  %v637_v62 = vld [vmem:[%s1148_s12] ss:$0 sm:$0xff] }
  0x20   :  { %669 = vmatprep.subr.mxu1 %v242_v6  ;;  %720 = vmatpush3.msra.mxu0 %v391_v63  ;;  %v384_v6 = vld [vmem:[%s1142_s9 + $0x10] sm:$0xff] }
  0x21   :  { %670 = vmatpush3.msra.mxu1 %v226_v7  ;;  %721 = vmatprep.subr.mxu0 %v390_v0  ;;  %v383_v7 = vld [vmem:[%s1142_s9 + $0x8] sm:$0xff] }
  0x22   :  { %671 = vmatprep.subr.mxu1 %v241_v8  ;;  %722 = vmatpush3.msra.mxu0 %v390_v0  ;;  %v382_v8 = vld [vmem:[%s1142_s9] sm:$0xff] }
  0x23   :  { %672 = vmatpush3.msra.mxu1 %v225_v9  ;;  %723 = vmatprep.subr.mxu0 %v389_v1 }
  0x24   :  { %724 = vmatpush3.msra.mxu0 %v389_v1 }
  0x25   :  { %725 = vmatprep.subr.mxu0 %v388_v2 }
  0x26   :  { %726 = vmatpush3.msra.mxu0 %v388_v2 }
  0x27   :  { %727 = vmatprep.subr.mxu0 %v387_v3 }
  0x28   :  { %728 = vmatpush3.msra.mxu0 %v387_v3 }
  0x29   :  { %729 = vmatprep.subr.mxu0 %v386_v4 }
  0x2a   :  { %730 = vmatpush3.msra.mxu0 %v386_v4 }
  0x2b   :  { %731 = vmatprep.subr.mxu0 %v385_v5 }
  0x2c   :  { %732 = vmatpush3.msra.mxu0 %v385_v5 }
  0x2d   :  { %733 = vmatprep.subr.mxu0 %v384_v6 }
  0x2e   :  { %734 = vmatpush3.msra.mxu0 %v384_v6  ;;  %v638_v6 = vld [vmem:[%s1149_s14] ss:$0 sm:$0xff] }
  0x2f   :  { %735 = vmatprep.subr.mxu0 %v383_v7 }
  0x30   :  { %736 = vmatpush3.msra.mxu0 %v383_v7 }
  0x31   :  { %737 = vmatprep.subr.mxu0 %v382_v8 }
  0x32   :  { %738 = vmatpush3.msra.mxu0 %v382_v8 }
  0xca   :  { %v145_v18 = vpop.f32.mrf.mxu0 }
  0xcb   :  { %v146_v20 = vadd.f32 %v145_v18, %v65_v16  ;;  %v156_v18 = vld [vmem:[%s1139_s3] sm:$0x3] }
  0xcc   :  { %v147_v19 = vpop.f32.mrf.mxu0 }
  0xcd   :  { %v148_v21 = vadd.f32 %v147_v19, %v69_v17  ;;  %v157_v19 = vld [vmem:[%s1140_s4] sm:$0x3] }
  0xce   :  { %v151_v22 = vpop.f32.mrf.mxu0 }
  0xcf   :  { %v158_v23 = vadd.f32 %v148_v21, %v146_v20  ;;  %v152_v25 = vadd.f32 %v151_v22, %v65_v16 }
  0xd0   :  { %v153_v24 = vpop.f32.mrf.mxu0 }
  0xd1   :  { %v154_v26 = vadd.f32 %v153_v24, %v69_v17  ;;  %159 = vadd.xlane.f32.xlu0 %v158_v23  ;;  %v210_v24 = vrot.slane %v157_v19, %v885_v13 }
  0xd3   :  { %v161_v27 = vadd.f32 %v154_v26, %v152_v25 }
  0xd5   :  { %162 = vadd.xlane.f32.xlu0 %v161_v27 }
 0x15a   :  { %v160_v33 = vpop.xlane.xlu0 %159 }
 0x15b   :  { %v165_v34 = vmul.f32 0.00390625, %v160_v33 }
 0x15d   :  { %v909_v35 = vsub.f32 %v146_v20, %v165_v34  ;;  %v911_v36 = vsub.f32 %v148_v21, %v165_v34  ;;  %v195_v20 = vrot.slane %v156_v18, %v885_v13  ;;  %v199_v21 = vrot.slane %v156_v18, %v887_v14  ;;  %v633_v18 = vld [vmem:[%s1143_s7] ss:$0 sm:$0xff] }
 0x15e   :  { %v163_v37 = vpop.xlane.xlu0 %162 }
 0x15f   :  { %v166_v38 = vmul.f32 0.00390625, %v163_v37  ;;  %v171_v39 = vmul.f32 %v909_v35, %v909_v35  ;;  %v172_v40 = vmul.f32 %v911_v36, %v911_v36 }
 0x161   :  { %v917_v41 = vsub.f32 %v152_v25, %v166_v38  ;;  %v919_v42 = vsub.f32 %v154_v26, %v166_v38  ;;  %v175_v43 = vadd.f32 %v172_v40, %v171_v39  ;;  %v214_v25 = vrot.slane %v157_v19, %v887_v14 }
 0x163   :  { %176 = vadd.xlane.f32.xlu1 %v175_v43  ;;  %v173_v44 = vmul.f32 %v917_v41, %v917_v41  ;;  %v174_v45 = vmul.f32 %v919_v42, %v919_v42 }
 0x165   :  { %v178_v46 = vadd.f32 %v174_v45, %v173_v44 }
 0x167   :  { %179 = vadd.xlane.f32.xlu1 %v178_v46 }
 0x1ec   :  { %v177_v10 = vpop.xlane.xlu1 %176 }
 0x1ed   :  { %v181_v11 = vmul.f32 0.00390625, %v177_v10 }
 0x1ef   :  { %v183_v12 = vadd.f32 1e-05, %v181_v11 }
 0x1f0   :  { %v180_v15 = vpop.xlane.xlu1 %179 }
 0x1f1   :  { %762 = vrsqrt.f32 %v183_v12  ;;  %v182_v16 = vmul.f32 0.00390625, %v180_v15 }
 0x1f3   :  { %v184_v17 = vadd.f32 1e-05, %v182_v16 }
 0x1f5   :  { %764 = vrsqrt.f32 %v184_v17 }
 0x1fe   :  { %v763_v22 = vpop.eup %762 }
 0x1ff   :  { %v188_v23 = vmul.f32 %v763_v22, %v911_v36  ;;  %v187_v26 = vmul.f32 %v763_v22, %v909_v35 }
 0x201   :  { %v203_v27 = vmul.f32 %v199_v21, %v188_v23  ;;  %v202_v28 = vmul.f32 %v195_v20, %v187_v26 }
 0x202   :  { %v765_v29 = vpop.eup %764 }
 0x203   :  { %v218_v30 = vadd.f32 %v214_v25, %v203_v27  ;;  %v217_v31 = vadd.f32 %v210_v24, %v202_v28  ;;  %v190_v32 = vmul.f32 %v765_v29, %v919_v42  ;;  %v189_v33 = vmul.f32 %v765_v29, %v917_v41  ;;  %v632_v42 = vld [vmem:[%s1141_s6] ss:$0 sm:$0xff] }
 0x204   :  { %v635_v29 = vld [vmem:[%s1145_s10] ss:$0 sm:$0xff] }
 0x205   :  { %v222_v34 = vmax.f32 %v218_v30, 0.0  ;;  %v221_v37 = vmax.f32 %v217_v31, 0.0  ;;  %v205_v38 = vmul.f32 %v199_v21, %v190_v32  ;;  %v204_v39 = vmul.f32 %v195_v20, %v189_v33  ;;  %v634_v20 = vld [vmem:[%s1144_s8] ss:$0 sm:$0xff] }
 0x207   :  { %328 = vmatprep.mubr.f32.mxu1 %v222_v34  ;;  %v220_v36 = vadd.f32 %v214_v25, %v205_v38  ;;  %v219_v13 = vadd.f32 %v210_v24, %v204_v39 }
 0x208   :  { %329 = vmatmul.mubr.f32.vlgmr.msra.gmra.mxu1 %v221_v37 }
 0x209   :  { %v224_v14 = vmax.f32 %v220_v36, 0.0  ;;  %v223_v40 = vmax.f32 %v219_v13, 0.0 }
 0x20b   :  { %333 = vmatprep.mubr.f32.mxu1 %v224_v14 }
 0x20c   :  { %334 = vmatmul.mubr.f32.gmra.mxu1 %v223_v40 }
 0x2c8   :  { %v673_v35 = vpop.f32.mrf.mxu1 }
 0x2ca   :  { %v674_v43 = vpop.f32.mrf.mxu1 }
 0x2cb   :  { %v675_v44 = vadd.f32 %v674_v43, %v673_v35 }
 0x2cc   :  { %v676_v41 = vpop.f32.mrf.mxu1 }
 0x2cd   :  { %v331_v45 = vadd.f32 %v675_v44, %v632_v42 }
 0x2ce   :  { %v677_v46 = vpop.f32.mrf.mxu1 }
 0x2cf   :  { %v678_v47 = vadd.f32 %v677_v46, %v676_v41  ;;  %341 = vadd.xlane.f32.xlu0 %v331_v45  ;;  %v535_v41 = vld [vmem:[%s1146_s13 + $0x38] sm:$0xff]  ;;  %v533_v46 = vld [vmem:[%s1146_s13 + $0x28] sm:$0xff] }
 0x2d0   :  { %742 = vmatprep.subr.mxu1 %v535_v41 }
 0x2d1   :  { %v336_v48 = vadd.f32 %v678_v47, %v632_v42  ;;  %743 = vmatpush3.msra.mxu1 %v535_v41  ;;  %v532_v47 = vld [vmem:[%s1146_s13 + $0x20] sm:$0xff] }
 0x2d3   :  { %343 = vadd.xlane.f32.xlu1 %v336_v48 }
 0x358   :  { %v342_v50 = vpop.xlane.xlu0 %341 }
 0x359   :  { %v346_v51 = vmul.f32 0.0078125, %v342_v50  ;;  %v529_v50 = vld [vmem:[%s1146_s13 + $0x8] sm:$0xff] }
 0x35b   :  { %v1026_v52 = vsub.f32 %v331_v45, %v346_v51  ;;  %v534_v45 = vld [vmem:[%s1146_s13 + $0x30] sm:$0xff]  ;;  %v528_v51 = vld [vmem:[%s1146_s13] sm:$0xff] }
 0x35c   :  { %v344_v53 = vpop.xlane.xlu1 %343  ;;  %744 = vmatprep.subr.mxu1 %v534_v45 }
 0x35d   :  { %v347_v54 = vmul.f32 0.0078125, %v344_v53  ;;  %v350_v55 = vmul.f32 %v1026_v52, %v1026_v52  ;;  %745 = vmatpush3.msra.mxu1 %v534_v45 }
 0x35e   :  { %746 = vmatprep.subr.mxu1 %v533_v46 }
 0x35f   :  { %v1030_v56 = vsub.f32 %v336_v48, %v347_v54  ;;  %352 = vadd.xlane.f32.xlu0 %v350_v55  ;;  %747 = vmatpush3.msra.mxu1 %v533_v46  ;;  %v531_v48 = vld [vmem:[%s1146_s13 + $0x18] sm:$0xff] }
 0x360   :  { %748 = vmatprep.subr.mxu1 %v532_v47 }
 0x361   :  { %v351_v57 = vmul.f32 %v1030_v56, %v1030_v56  ;;  %749 = vmatpush3.msra.mxu1 %v532_v47 }
 0x362   :  { %750 = vmatprep.subr.mxu1 %v531_v48 }
 0x363   :  { %354 = vadd.xlane.f32.xlu1 %v351_v57  ;;  %751 = vmatpush3.msra.mxu1 %v531_v48 }
 0x364   :  { %752 = vmatprep.subr.mxu1 %v530_v49 }
 0x365   :  { %753 = vmatpush3.msra.mxu1 %v530_v49 }
 0x366   :  { %754 = vmatprep.subr.mxu1 %v529_v50 }
 0x367   :  { %755 = vmatpush3.msra.mxu1 %v529_v50 }
 0x368   :  { %756 = vmatprep.subr.mxu1 %v528_v51 }
 0x369   :  { %757 = vmatpush3.msra.mxu1 %v528_v51 }
 0x3e8   :  { %v353_v9 = vpop.xlane.xlu0 %352 }
 0x3e9   :  { %v356_v10 = vmul.f32 0.0078125, %v353_v9 }
 0x3eb   :  { %v358_v11 = vadd.f32 1e-05, %v356_v10 }
 0x3ec   :  { %v355_v12 = vpop.xlane.xlu1 %354 }
 0x3ed   :  { %766 = vrsqrt.f32 %v358_v11  ;;  %v357_v15 = vmul.f32 0.0078125, %v355_v12 }
 0x3ef   :  { %v359_v16 = vadd.f32 1e-05, %v357_v15 }
 0x3f1   :  { %768 = vrsqrt.f32 %v359_v16 }
 0x3fa   :  { %v767_v17 = vpop.eup %766 }
 0x3fb   :  { %v362_v19 = vmul.f32 %v767_v17, %v1026_v52 }
 0x3fd   :  { %v370_v21 = vmul.f32 %v633_v18, %v362_v19 }
 0x3fe   :  { %v769_v22 = vpop.eup %768 }
 0x3ff   :  { %v363_v23 = vmul.f32 %v769_v22, %v1030_v56  ;;  %v378_v24 = vadd.f32 %v634_v20, %v370_v21 }
 0x401   :  { %v371_v25 = vmul.f32 %v633_v18, %v363_v23  ;;  %v380_v26 = vmax.f32 %v378_v24, 0.0 }
 0x403   :  { %v379_v27 = vadd.f32 %v634_v20, %v371_v25  ;;  %739 = vmatprep.mubr.f32.mxu0 %v380_v26 }
 0x405   :  { %v381_v28 = vmax.f32 %v379_v27, 0.0 }
 0x407   :  { %740 = vmatmul.mubr.f32.vlgmr.msra.gmra.mxu0 %v381_v28 }
 0x4c7   :  { %v741_v30 = vpop.f32.mrf.mxu0 }
 0x4c8   :  { %v477_v31 = vadd.f32 %v741_v30, %v635_v29 }
 0x4c9   :  { %v471_v32 = vpop.f32.mrf.mxu0 }
 0x4ca   :  { %v472_v33 = vadd.f32 %v635_v29, %v471_v32  ;;  %v486_v34 = vsel %vm482_vm1, %v477_v31, 0.0 }
 0x4cb   :  { %487 = vadd.xlane.f32.xlu1 %v486_v34 }
 0x4cc   :  { %v483_v37 = vsel %vm482_vm1, %v472_v33, 0.0 }
 0x4cd   :  { %484 = vadd.xlane.f32.xlu0 %v483_v37 }
 0x554   :  { %v488_v38 = vpop.xlane.xlu1 %487 }
 0x555   :  { %v491_v39 = vmul.f32 0.015625, %v488_v38 }
 0x556   :  { %v485_v36 = vpop.xlane.xlu0 %484 }
 0x557   :  { %v493_v13 = vsub.f32 %v477_v31, %v491_v39  ;;  %v490_v14 = vmul.f32 0.015625, %v485_v36 }
 0x559   :  { %v492_v40 = vsub.f32 %v472_v33, %v490_v14  ;;  %v495_v35 = vmul.f32 %v493_v13, %v493_v13 }
 0x55b   :  { %v499_v43 = vsel %vm482_vm1, %v495_v35, 0.0  ;;  %v494_v42 = vmul.f32 %v492_v40, %v492_v40 }
 0x55c   :  { %500 = vadd.xlane.f32.xlu1 %v499_v43 }
 0x55d   :  { %v496_v44 = vsel %vm482_vm1, %v494_v42, 0.0 }
 0x55e   :  { %497 = vadd.xlane.f32.xlu0 %v496_v44 }
 0x5e5   :  { %v501_v52 = vpop.xlane.xlu1 %500 }
 0x5e6   :  { %v503_v53 = vmul.f32 0.015625, %v501_v52 }
 0x5e7   :  { %v498_v54 = vpop.xlane.xlu0 %497 }
 0x5e8   :  { %v505_v55 = vadd.f32 1e-05, %v503_v53  ;;  %v502_v56 = vmul.f32 0.015625, %v498_v54 }
 0x5ea   :  { %770 = vrsqrt.f32 %v505_v55  ;;  %v504_v57 = vadd.f32 1e-05, %v502_v56 }
 0x5ec   :  { %772 = vrsqrt.f32 %v504_v57 }
 0x5f7   :  { %v771_v58 = vpop.eup %770 }
 0x5f8   :  { %v509_v60 = vmul.f32 %v771_v58, %v493_v13 }
 0x5f9   :  { %v773_v61 = vpop.eup %772 }
 0x5fa   :  { %v508_v63 = vmul.f32 %v773_v61, %v492_v40  ;;  %v517_v0 = vmul.f32 %v636_v59, %v509_v60 }
 0x5fc   :  { %v516_v1 = vmul.f32 %v636_v59, %v508_v63  ;;  %v525_v2 = vadd.f32 %v637_v62, %v517_v0 }
 0x5fe   :  { %v524_v3 = vadd.f32 %v637_v62, %v516_v1  ;;  %v527_v5 = vmax.f32 %v525_v2, 0.0 }
 0x600   :  { %v526_v4 = vmax.f32 %v524_v3, 0.0 }
 0x602   :  { %758 = vmatprep.mubr.msk.f32.mxu1 %vm482_vm1, %v526_v4 }
 0x603   :  { %759 = vmatmul.mubr.msk.f32.vlgmr.msra.gmra.mxu1 %vm482_vm1, %v527_v5 }
 0x6c3   :  { %v760_v7 = vpop.f32.mrf.mxu1 }
 0x6c4   :  { %v621_v8 = vadd.f32 %v760_v7, %v638_v6 }
 0x6c5   :  { %v615_v9 = vpop.f32.mrf.mxu1 }
 0x6c6   :  { %625 = vst [vmem:[%s1150_s15 + $0x8] sm:$0xff] %v621_v8  ;;  %v616_v10 = vadd.f32 %v638_v6, %v615_v9 }
 0x6c8   :  { %624 = vst [vmem:[%s1150_s15] sm:$0xff] %v616_v10 }

</bundles_post_ra>
